<compile_context>
chip_gen: v6e
topology: v6e:2x2x1
jax: 0.10.0
libtpu: 0.0.40
codegen_flags: <defaults>
</compile_context>

<pallas_src>
from functools import partial

import jax
import jax.numpy as jnp
from jax.experimental import pallas as pl
from jax.experimental.pallas import tpu as pltpu

_LANE = 128
_SUB = 8


def _round_up(x, m):
    return (x + m - 1) // m * m


def _focal_loss_kernel(preds_ref, labels_ref, out_ref, *, alpha, gamma,
                       mask_pad):
    """One grid step = TS*128 samples; classes on the cheap leading axis."""
    x = preds_ref[...].astype(jnp.float32)      # (C, TS, 128) — math in f32
    labels = labels_ref[...]                    # (TS, 128) int32 (-1 = padding)
    C, ts, lanes = x.shape

    # numerically-stable log-softmax over the class axis (leading dim — pure
    # VPU max/add across C vreg groups, no cross-lane work)
    m = jnp.max(x, axis=0)                      # (TS, 128)
    sumexp = jnp.sum(jnp.exp(x - m[None]), axis=0)
    lse = jnp.log(sumexp)                       # (TS, 128)

    # gather(1, labels) and alpha[labels] as compile-time-unrolled selects
    # (C is a small static constant for this module — no dynamic gather)
    x_sel = x[0]
    a_sel = jnp.full_like(m, jnp.float32(alpha[0]))
    for c in range(1, C):
        is_c = labels == c
        x_sel = jnp.where(is_c, x[c], x_sel)
        a_sel = jnp.where(is_c, jnp.float32(alpha[c]), a_sel)

    logp = x_sel - m - lse                      # log p_y   (TS, 128)
    p = jnp.exp(logp)
    one_m_p = 1.0 - p

    # (1 - p)^gamma: small integer gamma stays on the VPU (avoids the exp/log
    # pair and the exp(gamma*log(0)) edge path when p == 1).
    g = float(gamma)
    if g == int(g) and 0 <= int(g) <= 4:
        focal = jnp.ones_like(one_m_p)
        for _ in range(int(g)):
            focal = focal * one_m_p
    else:
        safe = jnp.maximum(one_m_p, jnp.float32(1e-30))
        focal = jnp.where(one_m_p > 0.0,
                          jnp.exp(jnp.float32(g) * jnp.log(safe)),
                          jnp.zeros_like(one_m_p))

    loss = -(a_sel * focal * logp)              # (TS, 128)

    if mask_pad:
        # padded samples carry the sentinel label -1 → zero their contribution
        loss = jnp.where(labels >= 0, loss, 0.0)

    # per-tile lane-dense (8, 128) partial sum: layout-preserving sublane-group
    # reshape + VPU adds → one unmasked, full-vreg store block per grid step
    out_ref[...] = loss.reshape(ts // _SUB, _SUB, lanes).sum(axis=0)


@partial(jax.jit,
         static_argnames=("alpha_t", "gamma", "size_average", "block_sublanes"))
def _focal_loss_impl(preds2d, labels1d, *, alpha_t, gamma, size_average,
                     block_sublanes):
    N, C = preds2d.shape

    # sample tiling: 128 samples per lane-row, TS sublane-rows per grid step
    rows = pl.cdiv(N, _LANE)
    ts = max(_SUB, min(_round_up(block_sublanes, _SUB), _round_up(rows, _SUB)))
    rows_p = _round_up(rows, ts)
    n_pad = rows_p * _LANE - N
    num_tiles = rows_p // ts

    # single layout pass (fused under jit): pad + transpose + reshape →
    # lane-dense (C, rows, 128) logits slab and (rows, 128) int32 label slab.
    # Padded labels get the sentinel -1 so the kernel needs no index iotas.
    preds_l = jnp.pad(preds2d, ((0, n_pad), (0, 0))).T.reshape(C, rows_p, _LANE)
    labels_l = jnp.pad(labels1d, (0, n_pad),
                       constant_values=-1).reshape(rows_p, _LANE)

    kernel = partial(_focal_loss_kernel, alpha=alpha_t, gamma=float(gamma),
                     mask_pad=(n_pad > 0))
    partials = pl.pallas_call(
        kernel,
        out_shape=jax.ShapeDtypeStruct((num_tiles * _SUB, _LANE), jnp.float32),
        grid_spec=pltpu.PrefetchScalarGridSpec(
            num_scalar_prefetch=0,
            grid=(num_tiles,),
            in_specs=[
                pl.BlockSpec((C, ts, _LANE), lambda i: (0, i, 0)),   # logits
                pl.BlockSpec((ts, _LANE), lambda i: (i, 0)),         # labels
            ],
            out_specs=pl.BlockSpec((_SUB, _LANE), lambda i: (i, 0)), # partials
        ),
        compiler_params=pltpu.CompilerParams(
            dimension_semantics=("parallel",)),  # independent tiles → 2 TCs on v7x
    )(preds_l, labels_l)

    total = jnp.sum(partials)
    return total / N if size_average else total


def focal_loss(preds, labels, *, alpha=0.25, gamma=2.0, num_classes=2,
               size_average=True, block_sublanes=512):
    """Pallas TPU focal-loss forward matching the PyTorch module."""
    preds2d = preds.reshape(-1, preds.shape[-1])      # (N, C), keep input dtype
    labels1d = labels.reshape(-1).astype(jnp.int32)
    C = preds2d.shape[1]

    if isinstance(alpha, (list, tuple)):
        alpha_t = tuple(float(a) for a in alpha)
    else:
        alpha_t = (float(alpha),) + (1.0 - float(alpha),) * (num_classes - 1)
    assert len(alpha_t) == C, "alpha length must match the class dimension"

    return _focal_loss_impl(preds2d, labels1d, alpha_t=alpha_t,
                            gamma=float(gamma),
                            size_average=bool(size_average),
                            block_sublanes=int(block_sublanes))


def _focal_loss_ref(preds, labels, *, alpha=0.25, gamma=2.0, num_classes=2,
                    size_average=True):
    # pure-JAX reference matching the PyTorch forward
    preds2d = preds.reshape(-1, preds.shape[-1]).astype(jnp.float32)
    labels1d = labels.reshape(-1).astype(jnp.int32)
    if isinstance(alpha, (list, tuple)):
        alpha_vec = jnp.asarray(alpha, jnp.float32)
    else:
        alpha_vec = jnp.concatenate(
            [jnp.full((1,), alpha, jnp.float32),
             jnp.full((num_classes - 1,), 1.0 - alpha, jnp.float32)])
    logsoft = jax.nn.log_softmax(preds2d, axis=1)
    logp = jnp.take_along_axis(logsoft, labels1d[:, None], axis=1)[:, 0]
    p = jnp.exp(logp)
    a = alpha_vec[labels1d]
    loss = -a * jnp.power(1.0 - p, gamma) * logp
    return jnp.mean(loss) if size_average else jnp.sum(loss)


if __name__ == "__main__":
    key = jax.random.PRNGKey(0)
    k1, k2, k3, k4, k5, k6 = jax.random.split(key, 6)

    # case 1: the module's natural small shape (batch=2, seq=8, num_classes=2)
    preds = jax.random.normal(k1, (2, 8, 2), dtype=jnp.float32)
    labels = jax.random.randint(k2, (2, 8), 0, 2, dtype=jnp.int32)
    out = jax.block_until_ready(
        focal_loss(preds, labels, alpha=0.25, gamma=2.0, num_classes=2,
                   size_average=True))
    ref = _focal_loss_ref(preds, labels, alpha=0.25, gamma=2.0, num_classes=2,
                          size_average=True)
    assert jnp.allclose(out, ref, rtol=1e-5, atol=1e-5), (out, ref)

    # case 2: multi-tile grid + padding-mask path (deliberately small tiles)
    preds2 = jax.random.normal(k3, (4, 300, 2), dtype=jnp.float32)
    labels2 = jax.random.randint(k4, (4, 300), 0, 2, dtype=jnp.int32)
    out2 = jax.block_until_ready(
        focal_loss(preds2, labels2, alpha=0.25, gamma=2.0, num_classes=2,
                   size_average=False, block_sublanes=8))
    ref2 = _focal_loss_ref(preds2, labels2, alpha=0.25, gamma=2.0,
                           num_classes=2, size_average=False)
    assert jnp.allclose(out2, ref2, rtol=1e-5, atol=1e-4), (out2, ref2)

    # case 3: bf16 input, list alpha, 3 classes, non-integer gamma path
    preds3 = jax.random.normal(k5, (2, 200, 3), dtype=jnp.bfloat16)
    labels3 = jax.random.randint(k6, (2, 200), 0, 3, dtype=jnp.int32)
    out3 = jax.block_until_ready(
        focal_loss(preds3, labels3, alpha=[0.5, 0.3, 0.2], gamma=1.5,
                   num_classes=3, size_average=True))
    ref3 = _focal_loss_ref(preds3, labels3, alpha=[0.5, 0.3, 0.2], gamma=1.5,
                           num_classes=3, size_average=True)
    assert jnp.allclose(out3, ref3, rtol=1e-3, atol=1e-3), (out3, ref3)

    print("KERNEL_OK")
</pallas_src>

<mosaic_0001>
module attributes {stable_mosaic.version = 11 : i64} {
  func.func @_focal_loss_kernel(%arg0: i32, %arg1: memref<2x8x128xf32, #tpu.memory_space<vmem>>, %arg2: memref<8x128xi32, #tpu.memory_space<vmem>>, %arg3: memref<8x128xf32, #tpu.memory_space<vmem>>) attributes {dimension_semantics = [#tpu.dimension_semantics<parallel>], iteration_bounds = array<i64: 1>, scalar_prefetch = 0 : i64, scratch_operands = 0 : i64, tpu.core_type = #tpu.core_type<tc>, window_params = [{transform_indices = @transform_0, window_bounds = array<i64: 2, 8, 128>}, {transform_indices = @transform_1, window_bounds = array<i64: 8, 128>}, {transform_indices = @transform_2, window_bounds = array<i64: 8, 128>}]} {
    %c0 = arith.constant 0 : index
    %c0_0 = arith.constant 0 : index
    %c0_1 = arith.constant 0 : index
    %0 = vector.load %arg1[%c0, %c0_0, %c0_1] : memref<2x8x128xf32, #tpu.memory_space<vmem>>, vector<2x8x128xf32>
    %c0_2 = arith.constant 0 : index
    %c0_3 = arith.constant 0 : index
    %1 = vector.load %arg2[%c0_2, %c0_3] : memref<8x128xi32, #tpu.memory_space<vmem>>, vector<8x128xi32>
    %cst = arith.constant dense<0xFF800000> : vector<8x128xf32>
    %2 = vector.multi_reduction <maximumf>, %0, %cst [0] : vector<2x8x128xf32> to vector<8x128xf32>
    %3 = vector.shape_cast %2 : vector<8x128xf32> to vector<1x8x128xf32>
    %4 = vector.broadcast %3 : vector<1x8x128xf32> to vector<2x8x128xf32>
    %5 = arith.subf %0, %4 : vector<2x8x128xf32>
    %6 = math.exp %5 : vector<2x8x128xf32>
    %cst_4 = arith.constant dense<0.000000e+00> : vector<8x128xf32>
    %7 = vector.multi_reduction <add>, %6, %cst_4 [0] : vector<2x8x128xf32> to vector<8x128xf32>
    %8 = math.log %7 : vector<8x128xf32>
    %9 = vector.extract_strided_slice %0 {offsets = [0, 0, 0], sizes = [1, 8, 128], strides = [1, 1, 1]} : vector<2x8x128xf32> to vector<1x8x128xf32>
    %10 = vector.shape_cast %9 : vector<1x8x128xf32> to vector<8x128xf32>
    %cst_5 = arith.constant 2.500000e-01 : f32
    %11 = vector.broadcast %cst_5 : f32 to vector<8x128xf32>
    %c1_i32 = arith.constant 1 : i32
    %12 = vector.broadcast %c1_i32 : i32 to vector<8x128xi32>
    %13 = arith.cmpi eq, %1, %12 : vector<8x128xi32>
    %14 = vector.extract_strided_slice %0 {offsets = [1, 0, 0], sizes = [1, 8, 128], strides = [1, 1, 1]} : vector<2x8x128xf32> to vector<1x8x128xf32>
    %15 = vector.shape_cast %14 : vector<1x8x128xf32> to vector<8x128xf32>
    %16 = arith.select %13, %15, %10 : vector<8x128xi1>, vector<8x128xf32>
    %cst_6 = arith.constant 7.500000e-01 : f32
    %17 = vector.broadcast %cst_6 : f32 to vector<8x128xf32>
    %18 = arith.select %13, %17, %11 : vector<8x128xi1>, vector<8x128xf32>
    %19 = arith.subf %16, %2 : vector<8x128xf32>
    %20 = arith.subf %19, %8 : vector<8x128xf32>
    %21 = math.exp %20 : vector<8x128xf32>
    %cst_7 = arith.constant 1.000000e+00 : f32
    %22 = vector.broadcast %cst_7 : f32 to vector<8x128xf32>
    %23 = arith.subf %22, %21 : vector<8x128xf32>
    %cst_8 = arith.constant 1.000000e+00 : f32
    %24 = vector.broadcast %cst_8 : f32 to vector<8x128xf32>
    %25 = arith.mulf %24, %23 : vector<8x128xf32>
    %26 = arith.mulf %25, %23 : vector<8x128xf32>
    %27 = arith.mulf %18, %26 : vector<8x128xf32>
    %28 = arith.mulf %27, %20 : vector<8x128xf32>
    %cst_9 = arith.constant 0.000000e+00 : f32
    %29 = vector.broadcast %cst_9 : f32 to vector<8x128xf32>
    %30 = arith.subf %29, %28 : vector<8x128xf32>
    %c0_i32 = arith.constant 0 : i32
    %31 = vector.broadcast %c0_i32 : i32 to vector<8x128xi32>
    %32 = arith.cmpi sge, %1, %31 : vector<8x128xi32>
    %cst_10 = arith.constant 0.000000e+00 : f32
    %33 = vector.broadcast %cst_10 : f32 to vector<8x128xf32>
    %34 = arith.select %32, %30, %33 : vector<8x128xi1>, vector<8x128xf32>
    %35 = vector.shape_cast %34 : vector<8x128xf32> to vector<1x8x128xf32>
    %cst_11 = arith.constant dense<0.000000e+00> : vector<8x128xf32>
    %36 = vector.multi_reduction <add>, %35, %cst_11 [0] : vector<1x8x128xf32> to vector<8x128xf32>
    %c0_12 = arith.constant 0 : index
    %c0_13 = arith.constant 0 : index
    %37 = vector.load %arg3[%c0_12, %c0_13] : memref<8x128xf32, #tpu.memory_space<vmem>>, vector<8x128xf32>
    tpu.vector_store %arg3[%c0_12, %c0_13], %36 {strides = array<i32>} : memref<8x128xf32, #tpu.memory_space<vmem>>, vector<8x128xf32>,
    return
  }
  func.func @transform_0(%arg0: i32) -> (i32, i32, i32) {
    %c0_i32 = arith.constant 0 : i32
    %c0_i32_0 = arith.constant 0 : i32
    %c0_i32_1 = arith.constant 0 : i32
    return %c0_i32, %arg0, %c0_i32_0 : i32, i32, i32
  }
  func.func @transform_1(%arg0: i32) -> (i32, i32) {
    %c0_i32 = arith.constant 0 : i32
    %c0_i32_0 = arith.constant 0 : i32
    return %arg0, %c0_i32 : i32, i32
  }
  func.func @transform_2(%arg0: i32) -> (i32, i32) {
    %c0_i32 = arith.constant 0 : i32
    %c0_i32_0 = arith.constant 0 : i32
    return %arg0, %c0_i32 : i32, i32
  }
}

</mosaic_0001>

<bundles_post_ra>
// kernel: _focal_loss_impl.1
= control target key start
LH: loop header
LB: loop body
LE: loop exit
PB: predicated region body
PF: predicated region fallthrough
CT: control target
= control target key end

     0   :  { %v53_v19 = vmov 0.25   ;;  %s81_s0 = inlined_call_operand.vmem [shape: f32[2,8,128], index: 0, kind: input, shape index: {}]   ;;  %s82_s1 = inlined_call_operand.vmem [shape: s32[8,128], index: 1, kind: input, shape index: {}]   ;;  %s83_s2 = inlined_call_operand.vmem [shape: f32[8,128], index: 2, kind: output, shape index: {}]  }
   0x1   :  { %v11_v0 = vld [vmem:[%s81_s0] sm:$0xff]  ;;  %v12_v1 = vld [vmem:[%s81_s0 + $0x8] sm:$0xff] }
   0x2   :  { %v14_v2 = vmax.f32 %v11_v0, %v12_v1  ;;  %v13_v10 = vld [vmem:[%s82_s1] sm:$0xff] }
   0x3   :  { %vm24_vm0 = vcmp.eq.s32.totalorder %v13_v10, 1  ;;  %vm36_vm1 = vcmp.ge.s32.totalorder %v13_v10, 0 }
   0x4   :  { %v15_v3 = vsub.f32 %v11_v0, %v14_v2  ;;  %v16_v4 = vsub.f32 %v12_v1, %v14_v2  ;;  %v25_v11 = vsel %vm24_vm0, %v12_v1, %v11_v0  ;;  %v26_v20 = vsel %vm24_vm0, 0.75, %v53_v19 }
   0x5   :  { %v27_v12 = vsub.f32 %v25_v11, %v14_v2 }
   0x6   :  { %v17_v5 = vmul.f32 1.442695, %v15_v3  ;;  %v19_v6 = vmul.f32 1.442695, %v16_v4 }
   0x8   :  { %45 = vpow2.f32 %v17_v5 }
   0x9   :  { %47 = vpow2.f32 %v19_v6 }
  0x15   :  { %v46_v7 = vpop.eup %45 }
  0x16   :  { %v48_v8 = vpop.eup %47 }
  0x17   :  { %v21_v9 = vadd.f32 %v48_v8, %v46_v7 }
  0x19   :  { %49 = vlog2.f32 %v21_v9 }
  0x26   :  { %v50_v13 = vpop.eup %49 }
  0x27   :  { %v23_v14 = vmul.f32 0.6931472, %v50_v13 }
  0x29   :  { %v28_v15 = vsub.f32 %v27_v12, %v23_v14 }
  0x2b   :  { %v29_v16 = vmul.f32 1.442695, %v28_v15 }
  0x2d   :  { %51 = vpow2.f32 %v29_v16 }
  0x3a   :  { %v52_v17 = vpop.eup %51 }
  0x3b   :  { %v31_v18 = vsub.f32 1.0, %v52_v17 }
  0x3d   :  { %v32_v21 = vmul.f32 %v31_v18, %v31_v18 }
  0x3f   :  { %v33_v22 = vmul.f32 %v32_v21, %v26_v20 }
  0x41   :  { %v34_v23 = vmul.f32 %v33_v22, %v28_v15 }
  0x43   :  { %v35_v24 = vsub.f32 0.0, %v34_v23 }
  0x45   :  { %v37_v25 = vsel %vm36_vm1, %v35_v24, 0.0 }
  0x46   :  { %39 = vst [vmem:[%s83_s2] sm:$0xff] %v37_v25 }

</bundles_post_ra>
